<compile_context>
chip_gen: v7x
topology: tpu7x:2x2x1
jax: 0.10.0
libtpu: 0.0.40
codegen_flags: <defaults>
</compile_context>

<pallas_src>
from functools import partial

import jax
import jax.numpy as jnp
from jax import lax
from jax.experimental import pallas as pl
from jax.experimental.pallas import tpu as pltpu


def _round_up(x, m):
    return (x + m - 1) // m * m


# ---------------------------------------------------------------------------
# Pass 1: conv (K shallow MXU matmuls) + optional ReLU + per-batch BN stats.
# ---------------------------------------------------------------------------
def _conv_stats_kernel(xm_ref, xh_ref, w_ref, y_ref, stats_ref, xw_ref, *,
                       TL, K, L_out, Lt_total, relu):
    # xm_ref:    (1, TL, Cin_p)       bf16  main input tile (rows j*TL..)
    # xh_ref:    (1, 8, Cin_p)        bf16  8-row halo (rows (j+1)*TL..)
    # w_ref:     (K, Cin_p, Cout_p)   bf16  per-tap conv weight (constant)
    # y_ref:     (1, TL, Cout_p)      bf16  conv(+ReLU) activations (intermediate)
    # stats_ref: (1, 8, Cout_p)       f32   rows 0/1 = per-batch sum / sum-of-sq
    # xw_ref:    (TL + 8, Cin_p)      bf16  scratch: stitched window (O(TL) VMEM)
    j = pl.program_id(1)

    # Stitch main tile + halo into one contiguous window.
    xw_ref[0:TL, :] = xm_ref[0]
    xw_ref[TL:TL + 8, :] = xh_ref[0]

    # K shallow matmuls accumulated in f32 (no im2col scratch / reload).
    acc = jnp.dot(xw_ref[0:TL, :], w_ref[0],
                  preferred_element_type=jnp.float32)
    for t in range(1, K):                       # K static -> unrolled
        acc += jnp.dot(xw_ref[t:t + TL, :], w_ref[t],
                       preferred_element_type=jnp.float32)
    if relu:
        acc = jnp.maximum(acc, 0.0)

    # bf16 intermediate write; statistics from the f32 value BEFORE the cast.
    y_ref[0] = acc.astype(jnp.bfloat16)

    if Lt_total != L_out:                       # static: only if length padding
        row = j * TL + lax.broadcasted_iota(jnp.int32, (TL, 1), 0)
        acc = jnp.where(row < L_out, acc, 0.0)

    s = jnp.concatenate([jnp.sum(acc, axis=0, keepdims=True),
                         jnp.sum(acc * acc, axis=0, keepdims=True)], axis=0)

    @pl.when(j == 0)
    def _():
        stats_ref[...] = jnp.zeros_like(stats_ref)

    stats_ref[0, 0:2, :] += s                   # single 2-sublane accumulate


# ---------------------------------------------------------------------------
# Pass 2: normalize (one f32 FMA) + fused NLC -> NCL transpose of the tile.
# ---------------------------------------------------------------------------
def _bn_apply_kernel(y_ref, scale_ref, shift_ref, o_ref, *, Cout_8):
    # y_ref: (1, TL2, Cout_p) bf16; scale/shift: (1, Cout_p) f32
    # o_ref: (1, Cout_8, TL2) f32  (NCL block, only real channel rows)
    y = y_ref[0].astype(jnp.float32) * scale_ref[...] + shift_ref[...]
    o_ref[0] = jnp.transpose(y)[:Cout_8, :]     # XLU transpose, sublane slice


def batch_norm_conv(x_ncl, weight, gamma, beta, *, relu=True, eps=1e-5):
    """Forward pass matching PyTorch BatchNormConv (training-mode BN).

    x_ncl:  (N, Cin, L)     conv input, PyTorch NCL layout
    weight: (Cout, Cin, K)  Conv1d weight (no bias)
    gamma:  (Cout,)         BatchNorm weight
    beta:   (Cout,)         BatchNorm bias
    returns (N, Cout, L_out) with L_out = L + 2*(K//2) - K + 1

    Note: conv inputs and the conv/ReLU intermediate are intentionally bf16
    (f32 MXU accumulation, f32 BN math) — a deliberate deviation from the
    all-f32 PyTorch module.
    """
    N, Cin, L = x_ncl.shape
    Cout, Cin_w, K = weight.shape
    assert Cin_w == Cin
    assert K <= 9, "halo block is 8 rows; TODO(synk): support K > 9"
    pad = K // 2
    L_out = L + 2 * pad - K + 1            # == L for odd K

    Cin_p = _round_up(Cin, 128)            # lane-dense channel padding
    Cout_p = _round_up(Cout, 128)
    Cout_8 = _round_up(Cout, 8)            # output channel rows (sublanes)

    # Tile selection (pass-2 tiles are lane-dense multiples of 128 when tiled).
    if L_out <= 1024:
        Lt_total = _round_up(L_out, 8)
        TL1 = TL2 = Lt_total
    else:
        Lt_total = _round_up(L_out, 512)
        TL1, TL2 = 256, 512
    nLt1 = Lt_total // TL1
    nLt2 = Lt_total // TL2
    Lp = Lt_total + 8                      # covers the K-1 <= 8 row halo

    # ---- glue: NCL -> NLC, bf16 cast, zero padding (channels + length) -----
    x_nlc = jnp.transpose(x_ncl, (0, 2, 1)).astype(jnp.bfloat16)   # (N, L, Cin)
    x_pad = jnp.pad(x_nlc, ((0, 0), (pad, Lp - L - pad), (0, Cin_p - Cin)))

    # Conv weight -> per-tap layout (K, Cin_p, Cout_p), bf16.
    w3d = jnp.transpose(weight, (2, 1, 0))
    w3d = jnp.pad(w3d, ((0, 0), (0, Cin_p - Cin), (0, Cout_p - Cout)))
    w3d = w3d.astype(jnp.bfloat16)

    # ---- explicit per-pass VMEM budgets -------------------------------------
    est1 = (2 * TL1 * Cin_p * 2            # x main tile (double-buffered, bf16)
            + 2 * 8 * Cin_p * 2            # x halo tile
            + 2 * K * Cin_p * Cout_p * 2   # conv weight
            + 2 * TL1 * Cout_p * 2         # y_int tile (bf16)
            + 2 * 8 * Cout_p * 4           # stats accumulator
            + (TL1 + 8) * Cin_p * 2        # stitched window scratch
            + TL1 * Cout_p * 4)            # f32 accumulator working set
    vmem1 = int(min(48 << 20, max(16 << 20, 2 * est1)))
    est2 = (2 * TL2 * Cout_p * 2           # y_int tile (bf16)
            + 2 * Cout_8 * TL2 * 4         # NCL output tile
            + 4 * Cout_p * 4               # scale / shift
            + TL2 * Cout_p * 4)            # f32 working set (incl. transpose)
    vmem2 = int(min(48 << 20, max(16 << 20, 2 * est2)))

    # ---- pass 1: conv + ReLU + per-batch sum / sumsq ------------------------
    y_int, stats = pl.pallas_call(
        partial(_conv_stats_kernel, TL=TL1, K=K, L_out=L_out,
                Lt_total=Lt_total, relu=relu),
        out_shape=(
            jax.ShapeDtypeStruct((N, Lt_total, Cout_p), jnp.bfloat16),
            jax.ShapeDtypeStruct((N, 8, Cout_p), jnp.float32),
        ),
        grid_spec=pltpu.PrefetchScalarGridSpec(
            num_scalar_prefetch=0,
            grid=(N, nLt1),
            in_specs=[
                pl.BlockSpec((1, TL1, Cin_p), lambda n, j: (n, j, 0)),
                pl.BlockSpec((1, 8, Cin_p),
                             lambda n, j: (n, (j + 1) * (TL1 // 8), 0)),
                pl.BlockSpec((K, Cin_p, Cout_p), lambda n, j: (0, 0, 0)),
            ],
            out_specs=[
                pl.BlockSpec((1, TL1, Cout_p), lambda n, j: (n, j, 0)),
                pl.BlockSpec((1, 8, Cout_p), lambda n, j: (n, 0, 0)),
            ],
            scratch_shapes=[pltpu.VMEM((TL1 + 8, Cin_p), jnp.bfloat16)],
        ),
        compiler_params=pltpu.CompilerParams(
            dimension_semantics=("parallel", "arbitrary"),
            vmem_limit_bytes=vmem1),
    )(x_pad, x_pad, w3d)

    # ---- tiny per-channel reduction (Cout_p-sized, negligible) -------------
    # TODO(synk): E[x^2]-E[x]^2 in f32 can lose precision for very large N*L.
    count = jnp.float32(N * L_out)
    mean = jnp.sum(stats[:, 0, :], axis=0) / count
    var = jnp.maximum(jnp.sum(stats[:, 1, :], axis=0) / count - mean * mean, 0.0)
    inv = lax.rsqrt(var + eps)
    gamma_p = jnp.pad(gamma.astype(jnp.float32), (0, Cout_p - Cout))
    beta_p = jnp.pad(beta.astype(jnp.float32), (0, Cout_p - Cout))
    scale = (gamma_p * inv).reshape(1, Cout_p)
    shift = (beta_p - mean * gamma_p * inv).reshape(1, Cout_p)

    # ---- pass 2: y * scale + shift, emitted directly as NCL blocks ----------
    out_p = pl.pallas_call(
        partial(_bn_apply_kernel, Cout_8=Cout_8),
        out_shape=jax.ShapeDtypeStruct((N, Cout_8, Lt_total), jnp.float32),
        grid_spec=pltpu.PrefetchScalarGridSpec(
            num_scalar_prefetch=0,
            grid=(N, nLt2),
            in_specs=[
                pl.BlockSpec((1, TL2, Cout_p), lambda n, j: (n, j, 0)),
                pl.BlockSpec((1, Cout_p), lambda n, j: (0, 0)),
                pl.BlockSpec((1, Cout_p), lambda n, j: (0, 0)),
            ],
            out_specs=pl.BlockSpec((1, Cout_8, TL2), lambda n, j: (n, 0, j)),
        ),
        compiler_params=pltpu.CompilerParams(
            dimension_semantics=("parallel", "parallel"),
            vmem_limit_bytes=vmem2),
    )(y_int, scale, shift)

    if Cout_8 == Cout and Lt_total == L_out:
        return out_p                        # zero-copy common case
    return out_p[:, :Cout, :L_out]


def _reference(x_ncl, weight, gamma, beta, relu=True, eps=1e-5):
    """Pure-JAX reference mirroring the PyTorch module (training-mode BN).

    Mirrors the kernel's intentional precision tradeoffs: bf16-rounded conv
    inputs and a bf16-rounded conv/ReLU intermediate; stats and BN math in f32.
    """
    K = weight.shape[-1]
    pad = K // 2
    xq = x_ncl.astype(jnp.bfloat16).astype(jnp.float32)
    wq = weight.astype(jnp.bfloat16).astype(jnp.float32)
    y = lax.conv_general_dilated(
        xq, wq, window_strides=(1,), padding=[(pad, pad)],
        dimension_numbers=("NCH", "OIH", "NCH"))
    if relu:
        y = jnp.maximum(y, 0.0)
    mean = jnp.mean(y, axis=(0, 2), keepdims=True)
    var = jnp.mean((y - mean) ** 2, axis=(0, 2), keepdims=True)
    yb = y.astype(jnp.bfloat16).astype(jnp.float32)   # bf16 intermediate
    return (yb - mean) * lax.rsqrt(var + eps) * gamma.reshape(1, -1, 1) \
        + beta.reshape(1, -1, 1)


if __name__ == "__main__":
    # Small deterministic config: Conv1d(in=4, out=8, kernel=5, pad=2, no bias)
    N, Cin, Cout, L, K = 2, 4, 8, 16, 5

    key = jax.random.PRNGKey(0)
    kx, kw = jax.random.split(key)
    x = jax.random.normal(kx, (N, Cin, L), dtype=jnp.float32)
    weight = jax.random.normal(kw, (Cout, Cin, K), dtype=jnp.float32) * 0.2
    gamma = jnp.full((Cout,), 1.5, jnp.float32)
    beta = jnp.full((Cout,), 0.1, jnp.float32)

    out = jax.block_until_ready(batch_norm_conv(x, weight, gamma, beta, relu=True))
    ref = _reference(x, weight, gamma, beta, relu=True)

    assert out.shape == (N, Cout, L), out.shape
    err = jnp.max(jnp.abs(out - ref))
    assert jnp.allclose(out, ref, atol=5e-3, rtol=5e-3), \
        f"mismatch vs reference, max abs err = {err}"

    print("KERNEL_OK")
</pallas_src>

<mosaic_0001>
module attributes {stable_mosaic.version = 11 : i64} {
  func.func @_conv_stats_kernel(%arg0: i32, %arg1: i32, %arg2: memref<1x16x128xbf16, #tpu.memory_space<vmem>>, %arg3: memref<1x8x128xbf16, #tpu.memory_space<vmem>>, %arg4: memref<5x128x128xbf16, #tpu.memory_space<vmem>>, %arg5: memref<1x16x128xbf16, #tpu.memory_space<vmem>>, %arg6: memref<1x8x128xf32, #tpu.memory_space<vmem>>, %arg7: memref<24x128xbf16, #tpu.memory_space<vmem>>) attributes {dimension_semantics = [#tpu.dimension_semantics<parallel>, #tpu.dimension_semantics<arbitrary>], iteration_bounds = array<i64: 2, 1>, scalar_prefetch = 0 : i64, scratch_operands = 1 : i64, tpu.core_type = #tpu.core_type<tc>, window_params = [{transform_indices = @transform_0, window_bounds = array<i64: 1, 16, 128>}, {transform_indices = @transform_1, window_bounds = array<i64: 1, 8, 128>}, {pipeline_mode = #tpu.pipeline_mode<synchronous>, transform_indices = @transform_2, window_bounds = array<i64: 5, 128, 128>}, {transform_indices = @transform_3, window_bounds = array<i64: 1, 16, 128>}, {transform_indices = @transform_4, window_bounds = array<i64: 1, 8, 128>}]} {
    %c0 = arith.constant 0 : index
    %c0_0 = arith.constant 0 : index
    %c0_1 = arith.constant 0 : index
    %0 = vector.load %arg2[%c0, %c0_0, %c0_1] : memref<1x16x128xbf16, #tpu.memory_space<vmem>>, vector<1x16x128xbf16>
    %1 = vector.shape_cast %0 : vector<1x16x128xbf16> to vector<16x128xbf16>
    %c0_2 = arith.constant 0 : index
    %c0_3 = arith.constant 0 : index
    %2 = vector.load %arg7[%c0_2, %c0_3] : memref<24x128xbf16, #tpu.memory_space<vmem>>, vector<16x128xbf16>
    tpu.vector_store %arg7[%c0_2, %c0_3], %1 {strides = array<i32>} : memref<24x128xbf16, #tpu.memory_space<vmem>>, vector<16x128xbf16>,
    %c0_4 = arith.constant 0 : index
    %c0_5 = arith.constant 0 : index
    %c0_6 = arith.constant 0 : index
    %3 = vector.load %arg3[%c0_4, %c0_5, %c0_6] : memref<1x8x128xbf16, #tpu.memory_space<vmem>>, vector<1x8x128xbf16>
    %4 = vector.shape_cast %3 : vector<1x8x128xbf16> to vector<8x128xbf16>
    %c16 = arith.constant 16 : index
    %c0_7 = arith.constant 0 : index
    %5 = vector.load %arg7[%c16, %c0_7] : memref<24x128xbf16, #tpu.memory_space<vmem>>, vector<8x128xbf16>
    tpu.vector_store %arg7[%c16, %c0_7], %4 {strides = array<i32>} : memref<24x128xbf16, #tpu.memory_space<vmem>>, vector<8x128xbf16>,
    %c0_8 = arith.constant 0 : index
    %c0_9 = arith.constant 0 : index
    %6 = vector.load %arg7[%c0_8, %c0_9] : memref<24x128xbf16, #tpu.memory_space<vmem>>, vector<16x128xbf16>
    %c0_10 = arith.constant 0 : index
    %c0_11 = arith.constant 0 : index
    %c0_12 = arith.constant 0 : index
    %7 = vector.load %arg4[%c0_10, %c0_11, %c0_12] : memref<5x128x128xbf16, #tpu.memory_space<vmem>>, vector<1x128x128xbf16>
    %8 = vector.shape_cast %7 : vector<1x128x128xbf16> to vector<128x128xbf16>
    %cst = arith.constant dense<0.000000e+00> : vector<16x128xf32>
    %9 = tpu.matmul %6, %8, %cst {dimension_numbers = #tpu.dot_dimension_numbers<[1], [0], [0], [1], [0, 0, 1, 1], [], []>} : vector<16x128xbf16>, vector<128x128xbf16>, vector<16x128xf32> -> vector<16x128xf32>
    %c1 = arith.constant 1 : index
    %c0_13 = arith.constant 0 : index
    %10 = vector.load %arg7[%c1, %c0_13] : memref<24x128xbf16, #tpu.memory_space<vmem>>, vector<16x128xbf16>
    %c1_14 = arith.constant 1 : index
    %c0_15 = arith.constant 0 : index
    %c0_16 = arith.constant 0 : index
    %11 = vector.load %arg4[%c1_14, %c0_15, %c0_16] : memref<5x128x128xbf16, #tpu.memory_space<vmem>>, vector<1x128x128xbf16>
    %12 = vector.shape_cast %11 : vector<1x128x128xbf16> to vector<128x128xbf16>
    %cst_17 = arith.constant dense<0.000000e+00> : vector<16x128xf32>
    %13 = tpu.matmul %10, %12, %cst_17 {dimension_numbers = #tpu.dot_dimension_numbers<[1], [0], [0], [1], [0, 0, 1, 1], [], []>} : vector<16x128xbf16>, vector<128x128xbf16>, vector<16x128xf32> -> vector<16x128xf32>
    %14 = arith.addf %9, %13 : vector<16x128xf32>
    %c2 = arith.constant 2 : index
    %c0_18 = arith.constant 0 : index
    %15 = vector.load %arg7[%c2, %c0_18] : memref<24x128xbf16, #tpu.memory_space<vmem>>, vector<16x128xbf16>
    %c2_19 = arith.constant 2 : index
    %c0_20 = arith.constant 0 : index
    %c0_21 = arith.constant 0 : index
    %16 = vector.load %arg4[%c2_19, %c0_20, %c0_21] : memref<5x128x128xbf16, #tpu.memory_space<vmem>>, vector<1x128x128xbf16>
    %17 = vector.shape_cast %16 : vector<1x128x128xbf16> to vector<128x128xbf16>
    %cst_22 = arith.constant dense<0.000000e+00> : vector<16x128xf32>
    %18 = tpu.matmul %15, %17, %cst_22 {dimension_numbers = #tpu.dot_dimension_numbers<[1], [0], [0], [1], [0, 0, 1, 1], [], []>} : vector<16x128xbf16>, vector<128x128xbf16>, vector<16x128xf32> -> vector<16x128xf32>
    %19 = arith.addf %14, %18 : vector<16x128xf32>
    %c3 = arith.constant 3 : index
    %c0_23 = arith.constant 0 : index
    %20 = vector.load %arg7[%c3, %c0_23] : memref<24x128xbf16, #tpu.memory_space<vmem>>, vector<16x128xbf16>
    %c3_24 = arith.constant 3 : index
    %c0_25 = arith.constant 0 : index
    %c0_26 = arith.constant 0 : index
    %21 = vector.load %arg4[%c3_24, %c0_25, %c0_26] : memref<5x128x128xbf16, #tpu.memory_space<vmem>>, vector<1x128x128xbf16>
    %22 = vector.shape_cast %21 : vector<1x128x128xbf16> to vector<128x128xbf16>
    %cst_27 = arith.constant dense<0.000000e+00> : vector<16x128xf32>
    %23 = tpu.matmul %20, %22, %cst_27 {dimension_numbers = #tpu.dot_dimension_numbers<[1], [0], [0], [1], [0, 0, 1, 1], [], []>} : vector<16x128xbf16>, vector<128x128xbf16>, vector<16x128xf32> -> vector<16x128xf32>
    %24 = arith.addf %19, %23 : vector<16x128xf32>
    %c4 = arith.constant 4 : index
    %c0_28 = arith.constant 0 : index
    %25 = vector.load %arg7[%c4, %c0_28] : memref<24x128xbf16, #tpu.memory_space<vmem>>, vector<16x128xbf16>
    %c4_29 = arith.constant 4 : index
    %c0_30 = arith.constant 0 : index
    %c0_31 = arith.constant 0 : index
    %26 = vector.load %arg4[%c4_29, %c0_30, %c0_31] : memref<5x128x128xbf16, #tpu.memory_space<vmem>>, vector<1x128x128xbf16>
    %27 = vector.shape_cast %26 : vector<1x128x128xbf16> to vector<128x128xbf16>
    %cst_32 = arith.constant dense<0.000000e+00> : vector<16x128xf32>
    %28 = tpu.matmul %25, %27, %cst_32 {dimension_numbers = #tpu.dot_dimension_numbers<[1], [0], [0], [1], [0, 0, 1, 1], [], []>} : vector<16x128xbf16>, vector<128x128xbf16>, vector<16x128xf32> -> vector<16x128xf32>
    %29 = arith.addf %24, %28 : vector<16x128xf32>
    %cst_33 = arith.constant 0.000000e+00 : f32
    %30 = vector.broadcast %cst_33 : f32 to vector<16x128xf32>
    %31 = arith.maximumf %29, %30 : vector<16x128xf32>
    %32 = arith.truncf %31 : vector<16x128xf32> to vector<16x128xbf16>
    %c0_34 = arith.constant 0 : index
    %c0_35 = arith.constant 0 : index
    %c0_36 = arith.constant 0 : index
    %33 = vector.load %arg5[%c0_34, %c0_35, %c0_36] : memref<1x16x128xbf16, #tpu.memory_space<vmem>>, vector<1x16x128xbf16>
    %34 = vector.shape_cast %33 : vector<1x16x128xbf16> to vector<16x128xbf16>
    %35 = vector.shape_cast %32 : vector<16x128xbf16> to vector<1x16x128xbf16>
    tpu.vector_store %arg5[%c0_34, %c0_35, %c0_36], %35 {strides = array<i32>} : memref<1x16x128xbf16, #tpu.memory_space<vmem>>, vector<1x16x128xbf16>,
    %cst_37 = arith.constant dense<0.000000e+00> : vector<128xf32>
    %36 = vector.multi_reduction <add>, %31, %cst_37 [0] : vector<16x128xf32> to vector<128xf32>
    %37 = vector.shape_cast %36 : vector<128xf32> to vector<1x128xf32>
    %38 = arith.mulf %31, %31 : vector<16x128xf32>
    %cst_38 = arith.constant dense<0.000000e+00> : vector<128xf32>
    %39 = vector.multi_reduction <add>, %38, %cst_38 [0] : vector<16x128xf32> to vector<128xf32>
    %40 = vector.shape_cast %39 : vector<128xf32> to vector<1x128xf32>
    %41 = tpu.concatenate %37, %40 in 0 : vector<1x128xf32>, vector<1x128xf32> -> vector<2x128xf32>
    %c0_i32 = arith.constant 0 : i32
    %42 = arith.cmpi eq, %arg1, %c0_i32 : i32
    %43 = arith.extui %42 : i1 to i32
    %c0_i32_39 = arith.constant 0 : i32
    %44 = arith.cmpi ne, %43, %c0_i32_39 : i32
    scf.if %44 {
      %cst_46 = arith.constant 0.000000e+00 : f32
      %51 = vector.broadcast %cst_46 : f32 to vector<1x8x128xf32>
      %c0_47 = arith.constant 0 : index
      %c0_48 = arith.constant 0 : index
      %c0_49 = arith.constant 0 : index
      %52 = vector.load %arg6[%c0_47, %c0_48, %c0_49] : memref<1x8x128xf32, #tpu.memory_space<vmem>>, vector<1x8x128xf32>
      tpu.vector_store %arg6[%c0_47, %c0_48, %c0_49], %51 {strides = array<i32>} : memref<1x8x128xf32, #tpu.memory_space<vmem>>, vector<1x8x128xf32>,
    } else {
    }
    %c0_40 = arith.constant 0 : index
    %c0_41 = arith.constant 0 : index
    %c0_42 = arith.constant 0 : index
    %45 = vector.load %arg6[%c0_40, %c0_41, %c0_42] : memref<1x8x128xf32, #tpu.memory_space<vmem>>, vector<1x2x128xf32>
    %46 = vector.shape_cast %45 : vector<1x2x128xf32> to vector<2x128xf32>
    %47 = arith.addf %46, %41 : vector<2x128xf32>
    %c0_43 = arith.constant 0 : index
    %c0_44 = arith.constant 0 : index
    %c0_45 = arith.constant 0 : index
    %48 = vector.load %arg6[%c0_43, %c0_44, %c0_45] : memref<1x8x128xf32, #tpu.memory_space<vmem>>, vector<1x2x128xf32>
    %49 = vector.shape_cast %48 : vector<1x2x128xf32> to vector<2x128xf32>
    %50 = vector.shape_cast %47 : vector<2x128xf32> to vector<1x2x128xf32>
    tpu.vector_store %arg6[%c0_43, %c0_44, %c0_45], %50 {strides = array<i32>} : memref<1x8x128xf32, #tpu.memory_space<vmem>>, vector<1x2x128xf32>,
    return
  }
  func.func @transform_0(%arg0: i32, %arg1: i32) -> (i32, i32, i32) {
    %c0_i32 = arith.constant 0 : i32
    %c0_i32_0 = arith.constant 0 : i32
    return %arg0, %arg1, %c0_i32 : i32, i32, i32
  }
  func.func @transform_1(%arg0: i32, %arg1: i32) -> (i32, i32, i32) {
    %c1_i32 = arith.constant 1 : i32
    %0 = arith.addi %arg1, %c1_i32 : i32
    %c2_i32 = arith.constant 2 : i32
    %1 = arith.muli %0, %c2_i32 : i32
    %c0_i32 = arith.constant 0 : i32
    %c0_i32_0 = arith.constant 0 : i32
    return %arg0, %1, %c0_i32 : i32, i32, i32
  }
  func.func @transform_2(%arg0: i32, %arg1: i32) -> (i32, i32, i32) {
    %c0_i32 = arith.constant 0 : i32
    %c0_i32_0 = arith.constant 0 : i32
    %c0_i32_1 = arith.constant 0 : i32
    %c0_i32_2 = arith.constant 0 : i32
    return %c0_i32, %c0_i32_0, %c0_i32_1 : i32, i32, i32
  }
  func.func @transform_3(%arg0: i32, %arg1: i32) -> (i32, i32, i32) {
    %c0_i32 = arith.constant 0 : i32
    %c0_i32_0 = arith.constant 0 : i32
    return %arg0, %arg1, %c0_i32 : i32, i32, i32
  }
  func.func @transform_4(%arg0: i32, %arg1: i32) -> (i32, i32, i32) {
    %c0_i32 = arith.constant 0 : i32
    %c0_i32_0 = arith.constant 0 : i32
    %c0_i32_1 = arith.constant 0 : i32
    return %arg0, %c0_i32, %c0_i32_0 : i32, i32, i32
  }
}

</mosaic_0001>

<bundles_post_ra>
// kernel: tpu_custom_call.1
= control target key start
LH: loop header
LB: loop body
LE: loop exit
PB: predicated region body
PF: predicated region fallthrough
CT: control target
= control target key end

     0   :  { %s2156_s0 = inlined_call_operand.hbm [shape: bf16[2,24,128], index: 0, kind: input, shape index: {}]   ;;  %s2157_s1 = inlined_call_operand.hbm [shape: bf16[2,24,128], index: 1, kind: input, shape index: {}]   ;;  %s2158_s2 = inlined_call_operand.hbm [shape: bf16[5,128,128], index: 2, kind: input, shape index: {}]   ;;  %s2159_s3 = inlined_call_operand.hbm [shape: bf16[2,16,128], index: 3, kind: output, shape index: {0}]   ;;  %s2160_s4 = inlined_call_operand.hbm [shape: f32[2,8,128], index: 4, kind: output, shape index: {1}]  }
   0x1   :  { %2169 = sst [smem:[#allocation20_spill]] %s2156_s0 }
   0x2   :  { %2170 = sst [smem:[#allocation21_spill]] %s2158_s2 }
   0x3   :  { %10 = vsyncpa [#allocation4], 0 }
   0x4   :  { %12 = vsyncpa [#allocation4 + $0x1], 0 }
   0x5   :  { %13 = vsyncpa [#allocation7], 0 }
   0x6   :  { %15 = vsyncpa [#allocation7 + $0x1], 0 }
   0x7   :  { %16 = vsyncpa [#allocation5], 0 }
   0x8   :  { %18 = vsyncpa [#allocation5 + $0x1], 0 }
   0x9   :  { %19 = vsyncpa [#allocation11], 0 }
   0xa   :  { %21 = vsyncpa [#allocation11 + $0x1], 0  ;;  %s1785_s15 = smov 0   ;;  %s1787_s16 = smov 0  }
   0xb   :  { %s1789_s17 = smov 0   ;;  %s1791_s18 = smov 0  }
   0xc   :  { %s1793_s19 = smov 0   ;;  %s1795_s20 = smov 0  }
   0xd LB: > { %2171 = sst [smem:[#allocation17_spill]] %s1735_s17  ;;  %s1816_s21 = sadd.s32 4294967295, %s1747_s20   ;;  %s1747_s20 = sphi %s1795_s20, %s27_s20   ;;  %s1743_s19 = sphi %s1793_s19, %s2199_s19   ;;  %s1739_s18 = sphi %s1791_s18, %s2198_s18   ;;  %s1735_s17 = sphi %s1789_s17, %s2194_s17   ;;  %s1731_s16 = sphi %s1787_s16, %s2197_s16   ;;  %s1727_s15 = sphi %s1785_s15, %s2196_s15  }
   0xe   : > { %s1164_s22 = sadd.s32 4294967294, %s1747_s20   ;;  %p61_p0 = scmp.ne.s32.totalorder %s1731_s16, %s1727_s15 }
   0xf   : > { %p2161_p1 = scmp.eq.s32.totalorder %s1816_s21, 0  ;;  %p146_p3 = scmp.eq.s32.totalorder %s1164_s22, 1 }
  0x10   : > { %p1165_p5 = scmp.ge.s32.totalorder %s1747_s20, 1  ;;  %p179_p7 = scmp.lt.s32.totalorder %s1747_s20, 3 }
  0x11   : > { %p1825_p4 = por %p2161_p1, %p61_p0  ;;  %p1830_p6 = por %p146_p3, %p61_p0 }
  0x12   : > { %p1835_p8 = pnand %p1165_p5, %p179_p7  ;;  %s1749_s26 = smov [#allocation8]  }
  0x13   : > { %s2172_s23 = scalar_select %p1825_p4, 1, 0 }
  0x14   : > { %s2173_s24 = scalar_select %p1830_p6, 1, 0 }
  0x15   : > { %s2174_s25 = scalar_select %p1835_p8, 1, 0 }
  0x16   : > { %s191_s27 = sshll.u32 %s1749_s26, 4  ;;  %p1413_p9 = pneg %p1835_p8  ;;  %s192_s27 = int_to_ptr.vmem [resolvable:$true] %s191_s27 }
  0x17   : > { %s39_s29 = sadd.s32 1, %s1743_s19  ;;  %s2176_s2 = sld [smem:[#allocation21_spill]] }
  0x18   : > { %p1844_p11 = pnand %p1413_p9, %p2161_p1 }
  0x1a   : > { %p1538_p13 = pneg %p1844_p11 }
  0x1d   : > { %s1536_s6 = scalar_lea.hbm %s2176_s2, 5120 }
  0x1e   : > { %p1537_p12 = scmp.ne.s32.totalorder %s2176_s2, %s1536_s6  ;;  %p1543_p5 = scmp.lt.u32.totalorder %s1536_s6, %s2176_s2 }
  0x20   : > { %p1539_p0 = pnand %p1538_p13, %p1537_p12 }
  0x22   : > { %p1540_p3 = pneg %p1539_p0 }
  0x24   : > { %p1545_p7 = pnand %p1543_p5, %p1540_p3 }
  0x26   : > { %1548 = shalt.err (!%p1545_p7)
}
  0x27   : > { %s1549_s11 = scalar_lea.vmem %s192_s27, 5120  ;;  %p1557_p2 = scmp.lt.s32.totalorder %s192_s27, %s192_s27 }
  0x28   : > { %p1550_p9 = scmp.ne.s32.totalorder %s192_s27, %s1549_s11  ;;  %p1558_p6 = scmp.lt.s32.totalorder %s1549_s11, %s1549_s11 }
  0x2a   : > { %p1552_p10 = pnand %p1550_p9, %p1538_p13  ;;  %p1559_p4 = por %p1558_p6, %p1557_p2 }
  0x2c   : > { %p1553_p1 = pneg %p1552_p10 }
  0x2e   : > { %p1560_p8 = pnand %p1559_p4, %p1553_p1 }
  0x30   : > { %1563 = shalt.err (!%p1560_p8)
}
  0x31   : > { %s2165_s12 = smov 64   ;;  %s1751_s13 = smov 4  }
  0x32   : > { %1416 = dma.hbm_to_vmem [thread:$0]  (!%p1844_p11), %s2176_s2, 5120, %s192_s27, [#allocation7], %s2165_s12, %s2165_s12, %s1751_s13  }
  0x33   : > { %p41_p1 = scmp.ge.s32.totalorder %s39_s29, 2  ;;  %s48_s26 = sadd.s32 1, %s1735_s17 }
  0x34   : > { %p55_p2 = scmp.ne.s32.totalorder %s1735_s17, %s1731_s16  ;;  %p56_p4 = scmp.eq.s32.totalorder %s1747_s20, 0 }
  0x35   : > { %s2201_s29 = smov (%p41_p1, %s39_s29), 0  ;;  %p2178_p8 = scmp.eq.s32.totalorder %s1816_s21, 1 }
  0x36   : > { %2177 = sst [smem:[#allocation18_spill]] %s2201_s29  ;;  %p57_p6 = por %p56_p4, %p55_p2 }
  0x37   : > { %p1876_p10 = por %p2178_p8, %p55_p2  ;;  %s43_s30 = ssub.s32 %s1743_s19, %s2201_s29 }
  0x38   : > { %p1432_p12 = scmp.lt.s32.totalorder %s1747_s20, 2  ;;  %p46_p13 = scmp.eq.s32.totalorder %s43_s30, 0 }
  0x39   : > { %s2179_s28 = scalar_select %p1876_p10, 1, 0 }
  0x3a   : > { %s1884_s5 = sand.u32 1, %s1735_s17   ;;  %s2164_s7 = smul.u32 192, %s1743_s19 }
  0x3b   : > { %s1168_s27 = sshll.u32 %s1884_s5, 3  ;;  %p1891_p11 = pnand %p1432_p12, %p57_p6 }
  0x3c   : > { %s1888_s6 = scalar_select %p46_p13, %s1735_s17, %s48_s26  }
  0x3d   : > { %s209_s8 = scalar_lea.vmem [#allocation3], %s1168_s27  ;;  %s2182_s0 = sld [smem:[#allocation20_spill]] }
  0x3e   : > { %2180 = sst [smem:[#allocation19_spill]] %s1888_s6  ;;  %s224_s9 = sshll.u32 %s209_s8, 4  ;;  %s1902_s9 = int_to_ptr.vmem [resolvable:$true] %s224_s9 }
  0x3f   : > { %s206_s30 = scalar_lea.sflag [#allocation4], %s1884_s5  ;;  %p1566_p3 = pneg %p1891_p11 }
  0x43   : > { %s1900_s22 = scalar_lea.hbm %s2182_s0, %s2164_s7  ;;  %s1569_s14 = scalar_lea.hbm %s2182_s0, 384 }
  0x44   : > { %s1564_s27 = scalar_lea.hbm %s1900_s22, 128  ;;  %p1570_p9 = scmp.lt.u32.totalorder %s1900_s22, %s2182_s0 }
  0x45   : > { %p1565_p0 = scmp.ne.s32.totalorder %s1900_s22, %s1564_s27  ;;  %p1571_p1 = scmp.lt.u32.totalorder %s1569_s14, %s1564_s27 }
  0x46   : > { %p1573_p4 = scmp.lt.u32.totalorder %s1564_s27, %s1900_s22 }
  0x47   : > { %p1567_p5 = pnand %p1566_p3, %p1565_p0  ;;  %p1572_p2 = por %p1571_p1, %p1570_p9 }
  0x49   : > { %p1568_p7 = pneg %p1567_p5  ;;  %p1574_p6 = por %p1573_p4, %p1572_p2 }
  0x4b   : > { %p1575_p8 = pnand %p1574_p6, %p1568_p7 }
  0x4d   : > { %1578 = shalt.err (!%p1575_p8)
}
  0x4e   : > { %s1579_s26 = scalar_lea.vmem %s1902_s9, 128  ;;  %s1752_s8 = smov [#allocation3]  }
  0x4f   : > { %p1580_p12 = scmp.ne.s32.totalorder %s1902_s9, %s1579_s26  ;;  %s1584_s11 = sshll.u32 %s1752_s8, 4  ;;  %s1585_s11 = int_to_ptr.vmem [resolvable:$false] %s1584_s11 }
  0x50   : > { %s1586_s12 = scalar_lea.vmem %s1585_s11, 256  ;;  %p1587_p5 = scmp.lt.s32.totalorder %s1902_s9, %s1585_s11 }
  0x51   : > { %p1582_p13 = pnand %p1580_p12, %p1566_p3  ;;  %p1588_p9 = scmp.lt.s32.totalorder %s1586_s12, %s1579_s26 }
  0x53   : > { %p1583_p0 = pneg %p1582_p13  ;;  %p1589_p1 = por %p1588_p9, %p1587_p5 }
  0x55   : > { %p1590_p2 = pnand %p1589_p1, %p1583_p0 }
  0x57   : > { %1593 = shalt.err (!%p1590_p2)
}
  0x58   : > { %s2183_s7 = smov 64   ;;  %s1170_s27 = sshll.u32 %s1884_s5, 2 }
  0x59   : > { %1420 = dma.hbm_to_vmem [thread:$0]  (!%p1891_p11), %s1900_s22, 128, %s1902_s9, %s206_s30, %s2183_s7, %s2183_s7, %s1751_s13  }
  0x5a   : > { %s2184_s14 = smul.u32 192, %s1743_s19  ;;  %s238_s0 = scalar_lea.vmem [#allocation6], %s1170_s27 }
  0x5b   : > { %s249_s2 = sshll.u32 %s238_s0, 4  ;;  %s2185_s29 = sand.u32 1, %s1747_s20   ;;  %s250_s2 = int_to_ptr.vmem [resolvable:$true] %s249_s2 }
  0x5c   : > { %s1065_s11 = scalar_lea.hbm %s2157_s1, %s2184_s14  ;;  %s235_s6 = scalar_lea.sflag [#allocation7], %s2185_s29 }
  0x5d   : > { %s1942_s12 = scalar_lea.hbm %s1065_s11, 128  ;;  %s1624_s17 = scalar_lea.hbm %s1065_s11, 192 }
  0x5e   : > { %p1595_p7 = scmp.ne.s32.totalorder %s1942_s12, %s1624_s17  ;;  %s1599_s9 = scalar_lea.hbm %s2157_s1, 384 }
  0x5f   : > { %p1600_p8 = scmp.lt.u32.totalorder %s1942_s12, %s2157_s1  ;;  %p1601_p12 = scmp.lt.u32.totalorder %s1599_s9, %s1624_s17 }
  0x60   : > { %p1597_p4 = pnand %p1595_p7, %p1566_p3  ;;  %p1603_p0 = scmp.lt.u32.totalorder %s1624_s17, %s1942_s12 }
  0x61   : > { %p1602_p13 = por %p1601_p12, %p1600_p8 }
  0x62   : > { %p1598_p6 = pneg %p1597_p4 }
  0x63   : > { %p1604_p5 = por %p1603_p0, %p1602_p13 }
  0x65   : > { %p1605_p9 = pnand %p1604_p5, %p1598_p6 }
  0x67   : > { %1608 = shalt.err (!%p1605_p9)
}
  0x68   : > { %s1609_s0 = scalar_lea.vmem %s250_s2, 64  ;;  %s1753_s29 = smov [#allocation6]  }
  0x69   : > { %p1610_p1 = scmp.ne.s32.totalorder %s250_s2, %s1609_s0  ;;  %s1614_s7 = sshll.u32 %s1753_s29, 4  ;;  %s1615_s7 = int_to_ptr.vmem [resolvable:$false] %s1614_s7 }
  0x6a   : > { %s1616_s27 = scalar_lea.vmem %s1615_s7, 128  ;;  %p1617_p4 = scmp.lt.s32.totalorder %s250_s2, %s1615_s7 }
  0x6b   : > { %p1612_p2 = pnand %p1610_p1, %p1566_p3  ;;  %p1618_p10 = scmp.lt.s32.totalorder %s1616_s27, %s1609_s0 }
  0x6d   : > { %p1613_p7 = pneg %p1612_p2  ;;  %p1619_p8 = por %p1618_p10, %p1617_p4 }
  0x6f   : > { %p1620_p12 = pnand %p1619_p8, %p1613_p7 }
  0x71   : > { %1623 = shalt.err (!%p1620_p12)
}
  0x72   : > { %1423 = dma.hbm_to_vmem [thread:$0]  (!%p1891_p11), %s1942_s12, 64, %s250_s2, %s235_s6  }
  0x73   : > { %p2186_p6 = scmp.ne.s32.totalorder %s2174_s25, 0 }
  0x74   : > { %s1967_s17 = sand.u32 (!%p2186_p6), 1, %s1731_s16   ;;  %p2187_p10 = scmp.ne.s32.totalorder (!%p2186_p6), %s2172_s23, 0 }
  0x75   : > { %258 = sbr.rel (%p2186_p6) target bundleno = 491 (0x1eb), region = 32  ;;  %s1970_s14 = sshll.u32 (!%p2186_p6), %s1967_s17, 3 }
  0x76   : > { %s261_s26 = scalar_lea.sflag (!%p2186_p6), [#allocation4], %s1967_s17  ;;  %s264_s8 = scalar_lea.vmem (!%p2186_p6), [#allocation3], %s1970_s14 }
  0x7c   : > { %1706 = dma.done.wait (%p2187_p10), %s261_s26, 128  }
  0x7d   : > { %1708 = vsyncadd (%p2187_p10), %s261_s26, 4294967168  ;;  %s269_s2 = sand.u32 1, %s1816_s21   ;;  %s1174_s25 = sshll.u32 %s1967_s17, 2 }
  0x7e   : > { %s270_s6 = scalar_lea.sflag [#allocation7], %s269_s2  ;;  %s1980_s10 = scalar_lea.vmem [#allocation6], %s1174_s25 }
  0x7f   : > { %1710 = dma.done.wait (%p2187_p10), %s270_s6, 64  }
  0x80   : > { %1712 = vsyncadd (%p2187_p10), %s270_s6, 4294967232  ;;  %p2188_p11 = scmp.eq.s32.totalorder %s1816_s21, 0 }
  0x82   : > { %1714 = dma.done.wait (%p2188_p11), [#allocation7], 5120   ;;  %p2189_p3 = pmov %p2188_p11 }
  0x83   : > { %v1754_v0 = vmov 0.0   ;;  %vm1755_vm0 = vmmov 0   ;;  %v1490_v1 = vld [vmem:[#allocation8 + $0x40] sm:$0xff]   ;;  %v1492_v3 = vld [vmem:[#allocation8 + $0x48] sm:$0xff]   ;;  %v1494_v5 = vld [vmem:[#allocation8 + $0x50] sm:$0xff]   ;;  %vm592_vm2 = vcmask 1046528  }
  0x84   : > { %1716 = vsyncadd (%p2189_p3), [#allocation7], 4294962176  ;;  %1286 = vmatprep.subr.bf16.mxu1 %v1754_v0  ;;  %1326 = vmatprep.subr.bf16.mxu0 %v1754_v0  ;;  %v1491_v2 = vld [vmem:[#allocation8 + $0x80] sm:$0xff]   ;;  %v1493_v4 = vld [vmem:[#allocation8 + $0x88] sm:$0xff]   ;;  %vm373_vm1 = vsmask.f32 7424 }
  0x85   : > { %1302 = vmatprep.mubr.msk.bf16.mxu1 %vm1755_vm0, %v1754_v0  ;;  %1342 = vmatprep.mubr.msk.bf16.mxu0 %vm1755_vm0, %v1754_v0  ;;  %v1495_v6 = vld [vmem:[#allocation8 + $0x90] sm:$0xff]   ;;  %v1496_v7 = vld [vmem:[#allocation8 + $0x58] sm:$0xff]   ;;  %v1498_v9 = vld [vmem:[#allocation8 + $0x60] sm:$0xff]   ;;  %vm709_vm3 = vsmask.f32 6400  ;;  %vm840_vm4 = vcmask 1045504  }
  0x86   : > { %1287 = vmatpush3.bf16.msra.mxu1 %v1490_v1  ;;  %1327 = vmatpush3.bf16.msra.mxu0 %v1491_v2  ;;  %v1497_v8 = vld [vmem:[#allocation8 + $0x98] sm:$0xff]   ;;  %v1499_v10 = vld [vmem:[#allocation8 + $0xa0] sm:$0xff]   ;;  %v321_v11 = vld [vmem:[%s264_s8] sm:$0xff]   ;;  %s2060_s21 = scalar_lea.vmem [#allocation10], %s1970_s14  ;;  %s1235_s23 = sshll.u32 %s1739_s18, 7 }
  0x87   : > { %1288 = vmatprep.subr.bf16.mxu1 %v1754_v0  ;;  %1328 = vmatprep.subr.bf16.mxu0 %v1754_v0  ;;  %v325_v12 = vld [vmem:[%s1980_s10] sm:$0xf]  ;;  %323 = vst [vmem:[#allocation2] sm:$0xff] %v321_v11   ;;  %v1500_v13 = vld [vmem:[#allocation8 + $0x68] sm:$0xff]   ;;  %v1502_v15 = vld [vmem:[#allocation8 + $0x70] sm:$0xff]   ;;  %s304_s11 = scalar_lea.vmem [#allocation9], %s1970_s14  ;;  %s2071_s9 = scalar_lea.hbm %s2159_s3, %s1235_s23 }
  0x88   : > { %326 = vst [vmem:[#allocation2 + $0x8] sm:$0xf] %v325_v12  ;;  %v1501_v14 = vld [vmem:[#allocation8 + $0xa8] sm:$0xff]   ;;  %v1503_v16 = vld [vmem:[#allocation8 + $0xb0] sm:$0xff]   ;;  %v1504_v19 = vld [vmem:[#allocation8 + $0x78] sm:$0xff]   ;;  %s995_s12 = sshll.u32 %s304_s11, 4  ;;  %s2073_s12 = int_to_ptr.vmem [resolvable:$true] %s995_s12 }
  0x89   : > { %v1505_v24 = vld [vmem:[#allocation8 + $0xb8] sm:$0xff]   ;;  %v1508_v32 = vld [vmem:[#allocation8] sm:$0xff]   ;;  %v1511_v37 = vld [vmem:[#allocation8 + $0x8] sm:$0xff]   ;;  %970 = vst [vmem:[%s2060_s21] sm:$0xff] %v1754_v0  ;;  %s975_s22 = scalar_lea.sflag [#allocation5], %s1967_s17  ;;  %s1625_s30 = scalar_lea.vmem %s2073_s12, 128 }
  0x8a   : > { %1289 = vmatpush3.bf16.msra.mxu1 %v1492_v3  ;;  %1329 = vmatpush3.bf16.msra.mxu0 %v1493_v4  ;;  %v1510_v35 = vld [vmem:[#allocation8 + $0xc0] sm:$0xff]   ;;  %v1512_v38 = vld [vmem:[#allocation8 + $0xc8] sm:$0xff]   ;;  %v1513_v39 = vld [vmem:[#allocation8 + $0x10] sm:$0xff]   ;;  %p1626_p13 = scmp.ne.s32.totalorder %s2073_s12, %s1625_s30  ;;  %p2190_p0 = scmp.ne.s32.totalorder %s2179_s28, 0 }
  0x8b   : > { %1290 = vmatprep.subr.bf16.mxu1 %v1754_v0  ;;  %1330 = vmatprep.subr.bf16.mxu0 %v1754_v0  ;;  %v1514_v40 = vld [vmem:[#allocation8 + $0xd0] sm:$0xff]   ;;  %v1515_v41 = vld [vmem:[#allocation8 + $0x18] sm:$0xff]   ;;  %v1517_v43 = vld [vmem:[#allocation8 + $0x20] sm:$0xff]   ;;  %s1756_s0 = smov [#allocation9]  }
  0x8c   : > { %v1516_v42 = vld [vmem:[#allocation8 + $0xd8] sm:$0xff]   ;;  %v1518_v44 = vld [vmem:[#allocation8 + $0xe0] sm:$0xff]   ;;  %v1519_v46 = vld [vmem:[#allocation8 + $0x28] sm:$0xff]   ;;  %p1627_p5 = pnand %p1626_p13, %p2190_p0  ;;  %s1629_s29 = sshll.u32 %s1756_s0, 4  ;;  %s1630_s29 = int_to_ptr.vmem [resolvable:$false] %s1629_s29 }
  0x8d   : > { %v1520_v47 = vld [vmem:[#allocation8 + $0xe8] sm:$0xff]   ;;  %v1521_v52 = vld [vmem:[#allocation8 + $0x30] sm:$0xff]   ;;  %v1523_v58 = vld [vmem:[#allocation8 + $0x38] sm:$0xff]   ;;  %s1631_s7 = scalar_lea.vmem %s1630_s29, 256  ;;  %p1632_p1 = scmp.lt.s32.totalorder %s2073_s12, %s1630_s29 }
  0x8e   : > { %1291 = vmatpush3.bf16.msra.mxu1 %v1494_v5  ;;  %1331 = vmatpush3.bf16.msra.mxu0 %v1495_v6  ;;  %v345_v17 = vld [vmem:[#allocation2] sm:$0xf]  ;;  %v2011_v18 = vld [vmem:[#allocation2 + $0x4] sm:$0xf]  ;;  %v1522_v53 = vld [vmem:[#allocation8 + $0xf0] sm:$0xff]   ;;  %p1628_p9 = pneg %p1627_p5  ;;  %p1633_p2 = scmp.lt.s32.totalorder %s1631_s7, %s1625_s30 }
  0x8f   : > { %1292 = vmatprep.subr.bf16.mxu1 %v1754_v0  ;;  %1332 = vmatprep.subr.bf16.mxu0 %v1754_v0  ;;  %v1178_v20 = vcombine.low %v345_v17, %v2011_v18  ;;  %v1507_v21 = vld [vmem:[#allocation2 + $0x8] ss:$0 sps:$4 sm:$0x11]   ;;  %v571_v22 = vld [vmem:[#allocation2] sm:$0xe]  ;;  %v1528_v2 = vld [vmem:[#allocation8 + $0x108] sm:$0xff]  }
  0x90   : > { %v2015_v23 = vcombine.low %v571_v22, %v2011_v18  ;;  %v382_v27 = vshll.u32 %v1507_v21, 16  ;;  %v594_v28 = vrot.slane %v1507_v21, 1  ;;  %v2033_v45 = vld [vmem:[#allocation2 + $0x8] ss:$0 sps:$4 sm:$0x33]   ;;  %v1524_v59 = vld [vmem:[#allocation8 + $0xf8] sm:$0xff]   ;;  %p1634_p7 = por %p1633_p2, %p1632_p1 }
  0x91   : > { %v375_v25 = vshrl.u32 %v1178_v20, 16  ;;  %v377_v26 = vshll.u32 %v1178_v20, 16  ;;  %v719_v50 = vshrl.u32 %v2033_v45, 16  ;;  %v722_v51 = vshll.u32 %v2033_v45, 16  ;;  %v1525_v62 = vld [vmem:[#allocation2] sm:$0xff]   ;;  %v1529_v3 = vld [vmem:[#allocation8 + $0x110] sm:$0xff]  }
  0x92   : > { %1293 = vmatpush3.bf16.msra.mxu1 %v1496_v7  ;;  %1333 = vmatpush3.bf16.msra.mxu0 %v1497_v8  ;;  %v593_v29 = vrot.slane %v2015_v23, 1  ;;  %v384_v31 = vrot.slane %v382_v27, 1  ;;  %v711_v48 = vshrl.u32 %v2015_v23, 16  ;;  %v714_v49 = vshll.u32 %v2015_v23, 16  ;;  %v1527_v1 = vld [vmem:[#allocation8 + $0x100] sm:$0xff]   ;;  %v1530_v4 = vld [vmem:[#allocation8 + $0x118] sm:$0xff]   ;;  %p1635_p4 = pnand %p1634_p7, %p1628_p9 }
  0x93   : > { %1294 = vmatprep.subr.bf16.mxu1 %v1754_v0  ;;  %1334 = vmatprep.subr.bf16.mxu0 %v1754_v0  ;;  %v379_v30 = vrot.slane %v377_v26, 1  ;;  %v721_v56 = vrot.slane %v719_v50, 1  ;;  %v724_v57 = vrot.slane %v722_v51, 2  ;;  %v1531_v5 = vld [vmem:[#allocation8 + $0x120] sm:$0xff]   ;;  %v1532_v6 = vld [vmem:[#allocation8 + $0x128] sm:$0xff]   ;;  %v1533_v8 = vld [vmem:[#allocation8 + $0x130] sm:$0xff]  }
  0x94   : > { %v595_v34 = vsel %vm592_vm2, %v593_v29, %v594_v28  ;;  %v713_v54 = vrot.slane %v711_v48, 1  ;;  %v716_v55 = vrot.slane %v714_v49, 2  ;;  %v819_v7 = vld [vmem:[#allocation2] sm:$0xc]  ;;  %v842_v12 = vrot.slane %v2033_v45, 2 }
  0x95   : > { %v380_v33 = vor.u32 %v379_v30, %v375_v25  ;;  %v725_v61 = vor.u32 %v724_v57, %v721_v56 }
  0x96   : > { %1295 = vmatpush3.bf16.msra.mxu1 %v1498_v9  ;;  %1335 = vmatpush3.bf16.msra.mxu0 %v1499_v10  ;;  %v717_v60 = vor.u32 %v716_v55, %v713_v54  ;;  %v1215_v9 = vcombine.low %v819_v7, %v2011_v18  ;;  %v1534_v10 = vld [vmem:[#allocation8 + $0x138] sm:$0xff]  }
  0x97   : > { %1296 = vmatprep.subr.bf16.mxu1 %v1754_v0  ;;  %1336 = vmatprep.subr.bf16.mxu0 %v1754_v0  ;;  %v385_v36 = vsel %vm373_vm1, %v380_v33, %v384_v31 }
  0x98   : > { %v726_v63 = vsel %vm709_vm3, %v717_v60, %v725_v61  ;;  %v841_v11 = vrot.slane %v1215_v9, 2 }
  0x9a   : > { %1297 = vmatpush3.bf16.msra.mxu1 %v1500_v13  ;;  %1337 = vmatpush3.bf16.msra.mxu0 %v1501_v14  ;;  %v843_v13 = vsel %vm840_vm4, %v841_v11, %v842_v12 }
  0x9b   : > { %1298 = vmatprep.subr.bf16.mxu1 %v1754_v0  ;;  %1338 = vmatprep.subr.bf16.mxu0 %v1754_v0 }
  0x9e   : > { %1299 = vmatpush3.bf16.msra.mxu1 %v1502_v15  ;;  %1339 = vmatpush3.bf16.msra.mxu0 %v1503_v16 }
  0x9f   : > { %1300 = vmatprep.subr.bf16.mxu1 %v1754_v0  ;;  %1340 = vmatprep.subr.bf16.mxu0 %v1754_v0 }
  0xa2   : > { %1301 = vmatpush3.bf16.msra.mxu1 %v1504_v19  ;;  %1341 = vmatpush3.bf16.msra.mxu0 %v1505_v24 }
  0xa3   : > { %1306 = vmatprep.subr.bf16.mxu1 %v1754_v0  ;;  %1346 = vmatprep.subr.bf16.mxu0 %v1754_v0 }
  0xa5   : > { %1303 = vmatmul.mubr.bf16.vlgmr.msra.gmra.mrb[0].mxu1 %v385_v36  ;;  %1343 = vmatmul.mubr.bf16.vlgmr.msra.gmra.mrb[0].mxu0 %v595_v34 }
  0xa6   : > { %1307 = vmatpush3.bf16.msra.mxu1 %v1508_v32  ;;  %1347 = vmatpush3.bf16.msra.mxu0 %v1510_v35 }
  0xa7   : > { %1308 = vmatprep.subr.bf16.mxu1 %v1754_v0  ;;  %1348 = vmatprep.subr.bf16.mxu0 %v1754_v0 }
  0xa8   : > { %1322 = vmatprep.mubr.msk.bf16.mxu1 %vm1755_vm0, %v1754_v0  ;;  %1362 = vmatprep.mubr.msk.bf16.mxu0 %vm1755_vm0, %v1754_v0 }
  0xaa   : > { %1309 = vmatpush3.bf16.msra.mxu1 %v1511_v37  ;;  %1349 = vmatpush3.bf16.msra.mxu0 %v1512_v38 }
  0xab   : > { %1310 = vmatprep.subr.bf16.mxu1 %v1754_v0  ;;  %1350 = vmatprep.subr.bf16.mxu0 %v1754_v0 }
  0xae   : > { %1311 = vmatpush3.bf16.msra.mxu1 %v1513_v39  ;;  %1351 = vmatpush3.bf16.msra.mxu0 %v1514_v40 }
  0xaf   : > { %1312 = vmatprep.subr.bf16.mxu1 %v1754_v0  ;;  %1352 = vmatprep.subr.bf16.mxu0 %v1754_v0 }
  0xb2   : > { %1313 = vmatpush3.bf16.msra.mxu1 %v1515_v41  ;;  %1353 = vmatpush3.bf16.msra.mxu0 %v1516_v42 }
  0xb3   : > { %1314 = vmatprep.subr.bf16.mxu1 %v1754_v0  ;;  %1354 = vmatprep.subr.bf16.mxu0 %v1754_v0 }
  0xb6   : > { %1315 = vmatpush3.bf16.msra.mxu1 %v1517_v43  ;;  %1355 = vmatpush3.bf16.msra.mxu0 %v1518_v44 }
  0xb7   : > { %1316 = vmatprep.subr.bf16.mxu1 %v1754_v0  ;;  %1356 = vmatprep.subr.bf16.mxu0 %v1754_v0 }
  0xba   : > { %1317 = vmatpush3.bf16.msra.mxu1 %v1519_v46  ;;  %1357 = vmatpush3.bf16.msra.mxu0 %v1520_v47 }
  0xbb   : > { %1318 = vmatprep.subr.bf16.mxu1 %v1754_v0  ;;  %1358 = vmatprep.subr.bf16.mxu0 %v1754_v0 }
  0xbe   : > { %1319 = vmatpush3.bf16.msra.mxu1 %v1521_v52  ;;  %1359 = vmatpush3.bf16.msra.mxu0 %v1522_v53 }
  0xbf   : > { %1320 = vmatprep.subr.bf16.mxu1 %v1754_v0  ;;  %1360 = vmatprep.subr.bf16.mxu0 %v1754_v0 }
  0xc2   : > { %1321 = vmatpush3.bf16.msra.mxu1 %v1523_v58  ;;  %1361 = vmatpush3.bf16.msra.mxu0 %v1524_v59 }
  0xc3   : > { %1366 = vmatprep.subr.bf16.mxu0 %v1754_v0 }
  0xc5   : > { %1323 = vmatmul.mubr.bf16.vlgmr.msra.gmra.mrb[0].mxu1 %v1525_v62  ;;  %1363 = vmatmul.mubr.bf16.vlgmr.msra.gmra.mrb[0].mxu0 %v726_v63 }
  0xc6   : > { %1367 = vmatpush3.bf16.msra.mxu0 %v1527_v1  ;;  %1382 = vmatprep.mubr.msk.bf16.mxu0 %vm1755_vm0, %v1754_v0 }
  0xc7   : > { %1368 = vmatprep.subr.bf16.mxu0 %v1754_v0 }
  0xca   : > { %1369 = vmatpush3.bf16.msra.mxu0 %v1528_v2 }
  0xcb   : > { %1370 = vmatprep.subr.bf16.mxu0 %v1754_v0 }
  0xce   : > { %1371 = vmatpush3.bf16.msra.mxu0 %v1529_v3 }
  0xcf   : > { %1372 = vmatprep.subr.bf16.mxu0 %v1754_v0 }
  0xd2   : > { %1373 = vmatpush3.bf16.msra.mxu0 %v1530_v4 }
  0xd3   : > { %1374 = vmatprep.subr.bf16.mxu0 %v1754_v0 }
  0xd6   : > { %1375 = vmatpush3.bf16.msra.mxu0 %v1531_v5 }
  0xd7   : > { %1376 = vmatprep.subr.bf16.mxu0 %v1754_v0 }
  0xda   : > { %1377 = vmatpush3.bf16.msra.mxu0 %v1532_v6 }
  0xdb   : > { %1378 = vmatprep.subr.bf16.mxu0 %v1754_v0 }
  0xde   : > { %1379 = vmatpush3.bf16.msra.mxu0 %v1533_v8 }
  0xdf   : > { %1380 = vmatprep.subr.bf16.mxu0 %v1754_v0 }
  0xe2   : > { %1381 = vmatpush3.bf16.msra.mxu0 %v1534_v10 }
  0xe5   : > { %1383 = vmatmul.mubr.bf16.vlgmr.msra.gmra.mrb[0].mxu0 %v843_v13 }
 0x198   : > { %v564_v14 = vpop.f32.mrb[0].mxu1 }
 0x199   : > { %v1324_v15 = vpop.f32.mrb[1].mxu1 }
 0x19a   : > { %v567_v16 = vpop.f32.mrb[2].mxu1 }
 0x19b   : > { %v1325_v17 = vpop.f32.mrb[3].mxu1 }
 0x1b8   : > { %v927_v18 = vpop.f32.mrb[0].mxu0 }
 0x1b9   : > { %v1386_v19 = vadd.f32 %v927_v18, %v564_v14  ;;  %v1384_v20 = vpop.f32.mrb[1].mxu0 }
 0x1ba   : > { %v930_v21 = vpop.f32.mrb[2].mxu0 }
 0x1bb   : > { %v936_v22 = vmax.f32 %v1386_v19, 0.0  ;;  %v1387_v23 = vadd.f32 %v930_v21, %v567_v16  ;;  %v1385_v24 = vpop.f32.mrb[3].mxu0 }
 0x1bd   : > { %v937_v25 = vmax.f32 %v1387_v23, 0.0  ;;  %v955_v0 = vmul.f32 %v936_v22, %v936_v22 }
 0x1bf   : > { %v1239_v26 = vpack.c.bf16 %v937_v25, %v936_v22  ;;  %v948_v27 = vadd.f32 %v937_v25, %v936_v22  ;;  %v956_v28 = vmul.f32 %v937_v25, %v937_v25 }
 0x1c1   : > { %1240 = vst [vmem:[%s304_s11] sm:$0xff] %v1239_v26   ;;  %v949_v29 = vrot.slane %v948_v27, 4  ;;  %v957_v30 = vadd.f32 %v956_v28, %v955_v0 }
 0x1c2   : > { %1638 = shalt.err (!%p1635_p4)
}
 0x1c3   : > { %s1639_s27 = scalar_lea.hbm %s2071_s9, 128  ;;  %s1643_s8 = scalar_lea.hbm %s2159_s3, 256 }
 0x1c4   : > { %p1640_p8 = scmp.ne.s32.totalorder %s2071_s9, %s1639_s27  ;;  %p1644_p10 = scmp.lt.u32.totalorder %s2071_s9, %s2159_s3 }
 0x1c5   : > { %p1645_p11 = scmp.lt.u32.totalorder %s1643_s8, %s1639_s27  ;;  %p1647_p13 = scmp.lt.u32.totalorder %s1639_s27, %s2071_s9 }
 0x1c6   : > { %p1641_p12 = pnand %p1640_p8, %p2190_p0 }
 0x1c7   : > { %p1646_p3 = por %p1645_p11, %p1644_p10 }
 0x1c8   : > { %p1642_p6 = pneg %p1641_p12 }
 0x1c9   : > { %p1648_p5 = por %p1647_p13, %p1646_p3 }
 0x1cb   : > { %p1649_p9 = pnand %p1648_p5, %p1642_p6 }
 0x1cd   : > { %1652 = shalt.err (!%p1649_p9)
}
 0x1ce   : > { %s1757_s6 = smov 64   ;;  %s1758_s10 = smov 4   ;;  %v950_v31 = vadd.f32 %v949_v29, %v948_v27  ;;  %v958_v32 = vrot.slane %v957_v30, 4  ;;  %vm964_vm5 = vcmask 1040384   ;;  %v971_v42 = vld [vmem:[%s2060_s21] sm:$0x3] }
 0x1cf   : > { %1409 = dma.vmem_to_hbm [thread:$0]  (%p2190_p0), %s2073_s12, 128, %s2071_s9, %s975_s22, %s1757_s6, %s1757_s6, %s1758_s10  }
 0x1d0   : > { %v951_v33 = vrot.slane %v950_v31, 2  ;;  %v959_v34 = vadd.f32 %v958_v32, %v957_v30  ;;  %s1011_s11 = sshll.u32 %s2060_s21, 4  ;;  %s2106_s5 = scalar_lea.hbm %s2160_s4, %s1235_s23  ;;  %s2108_s11 = int_to_ptr.vmem [resolvable:$true] %s1011_s11 }
 0x1d1   : > { %s980_s9 = scalar_lea.sflag [#allocation11], %s1967_s17  ;;  %s1653_s22 = scalar_lea.vmem %s2108_s11, 128 }
 0x1d2   : > { %v952_v35 = vadd.f32 %v951_v33, %v950_v31  ;;  %v960_v36 = vrot.slane %v959_v34, 2  ;;  %p1654_p1 = scmp.ne.s32.totalorder %s2108_s11, %s1653_s22  ;;  %s1759_s30 = smov [#allocation10]  }
 0x1d3   : > { %s1657_s0 = sshll.u32 %s1759_s30, 4  ;;  %s1658_s0 = int_to_ptr.vmem [resolvable:$false] %s1657_s0 }
 0x1d4   : > { %v953_v37 = vrot.slane %v952_v35, 1  ;;  %v961_v38 = vadd.f32 %v960_v36, %v959_v34  ;;  %p1655_p2 = pnand %p1654_p1, %p2190_p0  ;;  %s1659_s18 = scalar_lea.vmem %s1658_s0, 256 }
 0x1d5   : > { %p1660_p4 = scmp.lt.s32.totalorder %s2108_s11, %s1658_s0  ;;  %p1661_p8 = scmp.lt.s32.totalorder %s1659_s18, %s1653_s22 }
 0x1d6   : > { %v962_v39 = vrot.slane %v961_v38, 1  ;;  %v954_v40 = vadd.f32 %v953_v37, %v952_v35  ;;  %p1656_p7 = pneg %p1655_p2 }
 0x1d7   : > { %p1662_p12 = por %p1661_p8, %p1660_p4 }
 0x1d8   : > { %v963_v41 = vadd.f32 %v962_v39, %v961_v38 }
 0x1d9   : > { %p1663_p6 = pnand %p1662_p12, %p1656_p7 }
 0x1da   : > { %v965_v43 = vsel %vm964_vm5, %v954_v40, %v963_v41 }
 0x1db   : > { %v972_v44 = vadd.f32 %v971_v42, %v965_v43 }
 0x1dd   : > { %973 = vst [vmem:[%s2060_s21] sm:$0x3] %v972_v44 }
 0x1de   : > { %1666 = shalt.err (!%p1663_p6)
}
 0x1df   : > { %s1667_s17 = scalar_lea.hbm %s2106_s5, 128  ;;  %s1671_s29 = scalar_lea.hbm %s2160_s4, 256 }
 0x1e0   : > { %p1668_p10 = scmp.ne.s32.totalorder %s2106_s5, %s1667_s17  ;;  %p1672_p13 = scmp.lt.u32.totalorder %s2106_s5, %s2160_s4 }
 0x1e1   : > { %p1673_p5 = scmp.lt.u32.totalorder %s1671_s29, %s1667_s17  ;;  %p1675_p1 = scmp.lt.u32.totalorder %s1667_s17, %s2106_s5 }
 0x1e2   : > { %p1669_p11 = pnand %p1668_p10, %p2190_p0 }
 0x1e3   : > { %p1674_p9 = por %p1673_p5, %p1672_p13 }
 0x1e4   : > { %p1670_p3 = pneg %p1669_p11 }
 0x1e5   : > { %p1676_p2 = por %p1675_p1, %p1674_p9 }
 0x1e7   : > { %p1677_p7 = pnand %p1676_p2, %p1670_p3 }
 0x1e9   : > { %1680 = shalt.err (!%p1677_p7)
}
 0x1ea   : > { %1410 = dma.vmem_to_hbm [thread:$0]  (%p2190_p0), %s2108_s11, 128, %s2106_s5, %s980_s9  }
 0x1eb PF: > { %s1023_s14 = sand.u32 1, %s1727_s15   ;;  %p2191_p4 = scmp.ne.s32.totalorder %s2173_s24, 0 }
 0x1ec   : > { %p2192_p8 = scmp.ge.s32.totalorder %s1747_s20, 2  ;;  %s1024_s26 = scalar_lea.sflag [#allocation5], %s1023_s14 }
 0x1ee   : > { %p1425_p12 = pnand %p2192_p8, %p2191_p4 }
 0x1f0   : > { %1718 = dma.done.wait (!%p1425_p12), %s1024_s26, 128  }
 0x1f1   : > { %1720 = vsyncadd (!%p1425_p12), %s1024_s26, 4294967168  ;;  %s1033_s8 = scalar_lea.sflag [#allocation11], %s1023_s14 }
 0x1f2   : > { %1722 = dma.done.wait (!%p1425_p12), %s1033_s8, 128  }
 0x1f3   : > { %1724 = vsyncadd (!%p1425_p12), %s1033_s8, 4294967168  ;;  %s27_s20 = sadd.s32 1, %s1747_s20   ;;  %s2193_s28 = sld [smem:[#allocation17_spill]] }
 0x1f4   : > { %p24_p6 = scmp.ge.s32.totalorder %s27_s20, 4   ;;  %s2194_s17 = sld [smem:[#allocation19_spill]] }
 0x1f5   : > { %s2195_s2 = sld [smem:[#allocation18_spill]]  ;;  %s2196_s15 = smov %s1731_s16 }
 0x1f6   : > { %s2198_s18 = smov %s1743_s19  ;;  %26 = sbr.rel (!%p24_p6) target bundleno = 13 (0xd), region = 119 }
 0x1f9   : > { %s2197_s16 = smov %s2193_s28 }
 0x1fb   : > { %s2199_s19 = smov %s2195_s2 }
 0x1fd   :  { %1038 = vsyncpa [#allocation4], 1 }
 0x1fe   :  { %1040 = vsyncpa [#allocation4 + $0x1], 1 }
 0x1ff   :  { %1041 = vsyncpa [#allocation7], 1 }
 0x200   :  { %1043 = vsyncpa [#allocation7 + $0x1], 1 }
 0x201   :  { %1044 = vsyncpa [#allocation5], 1 }
 0x202   :  { %1046 = vsyncpa [#allocation5 + $0x1], 1 }
 0x203   :  { %1047 = vsyncpa [#allocation11], 1 }
 0x204   :  { %1049 = vsyncpa [#allocation11 + $0x1], 1 }

</bundles_post_ra>
